<compile_context>
chip_gen: v7x
topology: tpu7x:2x2x1
jax: 0.10.0
libtpu: 0.0.40
codegen_flags: <defaults>
</compile_context>

<pallas_src>
import functools

import jax
import jax.numpy as jnp
from jax import lax
from jax.experimental import pallas as pl
from jax.experimental.pallas import tpu as pltpu

_MIB = 1024 * 1024


def _round_down(x, m):
    return (x // m) * m


def _cdiv(a, b):
    return -(-a // b)


def _pick_kchunk_divisor(st):
    for k in (1024, 512, 256, 128):
        if st % k == 0:
            return k
    return 128


def _pick_unroll(n):
    return True if n <= 8 else 4


def _fc_sigmoid(pooled, w1, w2):
    """pooled (Bt, C) f32 -> sigmoid(relu(pooled @ w1^T) @ w2^T) (Bt, C) f32."""
    h = lax.dot_general(pooled, w1, (((1,), (1,)), ((), ())),
                        preferred_element_type=jnp.float32)          # (Bt, Cr)
    h = jnp.maximum(h, 0.0)
    y = lax.dot_general(h, w2, (((1,), (1,)), ((), ())),
                        preferred_element_type=jnp.float32)          # (Bt, C)
    return jax.nn.sigmoid(y)


# ---------------------------------------------------------------------------
# Fused single-pass kernel: pool -> FC -> sigmoid -> rescale on one resident
# (1, C, S) block.  x is read from HBM once and written once.
# ---------------------------------------------------------------------------
def _fused_kernel(x_ref, w1_ref, w2_ref, o_ref, acc_ref, *,
                  kchunk, inv_s, scale_dtype, carry_acc, unroll):
    bt, c, s = x_ref.shape
    n_full = s // kchunk
    rem = s - n_full * kchunk

    # ---- global average pool (f32 sum, single cross-lane reduce) ----
    def chunk_add(i, part):
        off = pl.multiple_of(i * kchunk, kchunk)
        blk = x_ref[:, :, pl.ds(off, kchunk)].astype(jnp.float32)
        for j in range(kchunk // 128):                 # lane-aligned VPU adds
            part = part + blk[:, :, j * 128:(j + 1) * 128]
        return part

    acc_ref[...] = jnp.zeros_like(acc_ref)
    if n_full > 0:
        if carry_acc:                                  # keep partial in vregs
            acc_ref[...] = lax.fori_loop(0, n_full, chunk_add, acc_ref[...],
                                         unroll=unroll)
        else:
            def rmw(i, carry):
                acc_ref[...] = chunk_add(i, acc_ref[...])
                return carry
            lax.fori_loop(0, n_full, rmw, 0, unroll=unroll)

    pooled = jnp.sum(acc_ref[...], axis=-1)                          # (1, C)
    if rem > 0:   # ragged spatial tail (static slice), no host padding needed
        tail = x_ref[:, :, n_full * kchunk:].astype(jnp.float32)
        pooled = pooled + jnp.sum(tail, axis=-1)
    pooled = pooled * inv_s

    # ---- FC -> ReLU -> FC -> sigmoid ----
    scale = _fc_sigmoid(pooled, w1_ref[...], w2_ref[...]).astype(scale_dtype)

    # ---- rescale the resident block (lane-broadcast hoisted out of loop) ----
    scale_b = jnp.broadcast_to(scale[:, :, None], (bt, c, kchunk))

    def chunk_scale(i, carry):
        off = pl.multiple_of(i * kchunk, kchunk)
        blk = x_ref[:, :, pl.ds(off, kchunk)]
        o_ref[:, :, pl.ds(off, kchunk)] = (blk * scale_b).astype(o_ref.dtype)
        return carry

    if n_full > 0:
        lax.fori_loop(0, n_full, chunk_scale, 0, unroll=unroll)
    if rem > 0:
        tail = x_ref[:, :, n_full * kchunk:]
        o_ref[:, :, n_full * kchunk:] = (
            tail * scale_b[:, :, :rem]).astype(o_ref.dtype)


# ---------------------------------------------------------------------------
# Two-pass path, pass 1: global average pool + FC + sigmoid -> (B, 1, C) scales
# ---------------------------------------------------------------------------
def _pool_fc_kernel(x_ref, w1_ref, w2_ref, y_ref, acc_ref, *,
                    kchunk, inv_s, s_total, st, needs_mask, carry_acc, unroll):
    s_idx = pl.program_id(1)

    @pl.when(s_idx == 0)
    def _():
        acc_ref[...] = jnp.zeros_like(acc_ref)

    bt, c, st_blk = x_ref.shape
    n_chunks = st_blk // kchunk

    def chunk_add(i, part):
        off = pl.multiple_of(i * kchunk, kchunk)
        blk = x_ref[:, :, pl.ds(off, kchunk)].astype(jnp.float32)
        if needs_mask:  # zero garbage lanes of the partial last spatial block
            lane = lax.broadcasted_iota(jnp.int32, (bt, c, kchunk), 2)
            gidx = s_idx * st + off + lane
            blk = jnp.where(gidx < s_total, blk, 0.0)
        for j in range(kchunk // 128):
            part = part + blk[:, :, j * 128:(j + 1) * 128]
        return part

    if carry_acc:
        acc_ref[...] = lax.fori_loop(0, n_chunks, chunk_add, acc_ref[...],
                                     unroll=unroll)
    else:
        def rmw(i, carry):
            acc_ref[...] = chunk_add(i, acc_ref[...])
            return carry
        lax.fori_loop(0, n_chunks, rmw, 0, unroll=unroll)

    @pl.when(s_idx == pl.num_programs(1) - 1)
    def _():
        pooled = jnp.sum(acc_ref[...], axis=-1) * inv_s              # (Bt, C)
        scale = _fc_sigmoid(pooled, w1_ref[...], w2_ref[...])
        y_ref[...] = scale[:, None, :].astype(y_ref.dtype)           # (Bt,1,C)


# ---------------------------------------------------------------------------
# Two-pass path, pass 2: tiled channel-wise rescale
# ---------------------------------------------------------------------------
def _rescale_kernel(x_ref, y_ref, o_ref, *, kchunk, scale_dtype, unroll):
    bt, c, st_blk = x_ref.shape
    scale = y_ref[:, 0, :].astype(scale_dtype)                       # (Bt, C)
    scale_b = jnp.broadcast_to(scale[:, :, None], (bt, c, kchunk))   # hoisted

    def chunk_scale(i, carry):
        off = pl.multiple_of(i * kchunk, kchunk)
        blk = x_ref[:, :, pl.ds(off, kchunk)]                 # stays in x dtype
        o_ref[:, :, pl.ds(off, kchunk)] = (blk * scale_b).astype(o_ref.dtype)
        return carry

    lax.fori_loop(0, st_blk // kchunk, chunk_scale, 0, unroll=unroll)


# ---------------------------------------------------------------------------
# Wrapper
# ---------------------------------------------------------------------------
def _tpu_vmem_bytes():
    try:
        return int(pltpu.get_tpu_info().vmem_capacity_bytes)
    except Exception:
        return 128 * _MIB          # conservative default (v5e/v6e class)


def _vmem_limit(need_bytes, vmem_phys):
    lim = max(need_bytes + 4 * _MIB, 16 * _MIB)
    return int(min(lim, (vmem_phys * 3) // 4))


def se_block(x, w1, w2, *, target_block_bytes=None, allow_fused=True):
    """x: (B, C, D, H, W); w1: (C//r, C); w2: (C, C//r) (bias-free Linears)."""
    B, C, D, H, W = x.shape
    S = D * H * W
    Cr = w1.shape[0]
    itemsize = jnp.dtype(x.dtype).itemsize
    w_bytes = (w1.size + w2.size) * jnp.dtype(w1.dtype).itemsize

    vmem_phys = _tpu_vmem_bytes()
    if target_block_bytes is None:
        # Bigger tiles on 64 MiB-VMEM parts (v7x): HBM is ~2.5x faster there,
        # so the fixed ~0.35us per-grid-step cost needs more bytes to amortize.
        target_block_bytes = 8 * _MIB if vmem_phys <= 64 * _MIB else 4 * _MIB

    xf = x.reshape(B, C, S)                 # free: row-major metadata reshape
    scale_dtype = jnp.float32 if x.dtype == jnp.float32 else x.dtype

    # -------------------- fused single-pass path (2x |x| traffic) ----------
    fused_kchunk = (1024 if S >= 1024 else 512 if S >= 512 else
                    256 if S >= 256 else 128)
    fused_blk = C * S * itemsize
    fused_need = (4 * fused_blk             # double-buffered in + out blocks
                  + C * 128 * 4             # pooled-sum scratch
                  + 2 * w_bytes             # double-buffered weights
                  + C * fused_kchunk * 4)   # hoisted scale broadcast
    fused_ok = fused_need <= int(vmem_phys * 0.4)
    if (allow_fused and fused_ok) or S < 128:
        n_full = S // fused_kchunk
        out = pl.pallas_call(
            functools.partial(
                _fused_kernel, kchunk=fused_kchunk, inv_s=1.0 / S,
                scale_dtype=scale_dtype,
                carry_acc=(C * 128 * 4 <= 128 * 1024),
                unroll=_pick_unroll(max(n_full, 1))),
            out_shape=jax.ShapeDtypeStruct((B, C, S), x.dtype),
            grid_spec=pltpu.PrefetchScalarGridSpec(
                num_scalar_prefetch=0,
                grid=(B,),
                in_specs=[
                    pl.BlockSpec((1, C, S), lambda b: (b, 0, 0)),
                    pl.BlockSpec((Cr, C), lambda b: (0, 0)),
                    pl.BlockSpec((C, Cr), lambda b: (0, 0)),
                ],
                out_specs=pl.BlockSpec((1, C, S), lambda b: (b, 0, 0)),
                scratch_shapes=[pltpu.VMEM((1, C, 128), jnp.float32)],
            ),
            compiler_params=pltpu.CompilerParams(
                dimension_semantics=("parallel",),
                vmem_limit_bytes=_vmem_limit(fused_need, vmem_phys)),
        )(xf, w1, w2)
        return out.reshape(B, C, D, H, W)

    # -------------------- two-pass tiled path (large volumes) --------------
    # Batch tile: unconstrained by the (8,128) rule because scales are stored
    # as (B, 1, C).  Keep >= 2 batch blocks when B >= 2 (megacore / v7x).
    bt_cap = max(1, target_block_bytes // (C * 128 * itemsize))
    Bt = max(1, min(B, 8, bt_cap))
    if B >= 2 and Bt >= B:
        Bt = _cdiv(B, 2)
    nB = _cdiv(B, Bt)

    # Spatial tile: multiple of 128 lanes, <= S; ragged tail masked in-kernel.
    st_budget = max(128, _round_down(target_block_bytes // (Bt * C * itemsize), 128))
    St = min(st_budget, _round_down(S, 128))          # S >= 128 on this path
    nS = _cdiv(S, St)
    needs_mask = (S % St) != 0
    kchunk = _pick_kchunk_divisor(St)
    unroll = _pick_unroll(St // kchunk)
    carry_acc = (Bt * C * 128 * 4) <= 128 * 1024

    x_blk = Bt * C * St * itemsize
    y_blk = Bt * C * 4
    acc_bytes = Bt * C * 128 * 4

    # Pass 1: global average pool + FC + sigmoid -> per-(b, c) scales.
    need1 = 2 * x_blk + 2 * w_bytes + 2 * y_blk + acc_bytes
    scales = pl.pallas_call(
        functools.partial(
            _pool_fc_kernel, kchunk=kchunk, inv_s=1.0 / S, s_total=S, st=St,
            needs_mask=needs_mask, carry_acc=carry_acc, unroll=unroll),
        out_shape=jax.ShapeDtypeStruct((B, 1, C), jnp.float32),
        grid_spec=pltpu.PrefetchScalarGridSpec(
            num_scalar_prefetch=0,
            grid=(nB, nS),
            in_specs=[
                pl.BlockSpec((Bt, C, St), lambda b, s: (b, 0, s)),
                pl.BlockSpec((Cr, C), lambda b, s: (0, 0)),
                pl.BlockSpec((C, Cr), lambda b, s: (0, 0)),
            ],
            out_specs=pl.BlockSpec((Bt, 1, C), lambda b, s: (b, 0, 0)),
            scratch_shapes=[pltpu.VMEM((Bt, C, 128), jnp.float32)],
        ),
        compiler_params=pltpu.CompilerParams(
            dimension_semantics=("parallel", "arbitrary"),
            vmem_limit_bytes=_vmem_limit(need1, vmem_phys)),
    )(xf, w1, w2)

    # Pass 2: tiled channel-wise rescale (partial edge blocks clip on writeback).
    need2 = 4 * x_blk + 2 * y_blk + Bt * C * kchunk * 4
    out = pl.pallas_call(
        functools.partial(_rescale_kernel, kchunk=kchunk,
                          scale_dtype=scale_dtype, unroll=unroll),
        out_shape=jax.ShapeDtypeStruct((B, C, S), x.dtype),
        grid_spec=pltpu.PrefetchScalarGridSpec(
            num_scalar_prefetch=0,
            grid=(nB, nS),
            in_specs=[
                pl.BlockSpec((Bt, C, St), lambda b, s: (b, 0, s)),
                pl.BlockSpec((Bt, 1, C), lambda b, s: (b, 0, 0)),
            ],
            out_specs=pl.BlockSpec((Bt, C, St), lambda b, s: (b, 0, s)),
        ),
        compiler_params=pltpu.CompilerParams(
            dimension_semantics=("parallel", "parallel"),
            vmem_limit_bytes=_vmem_limit(need2, vmem_phys)),
    )(xf, scales)
    # TODO(synk): input_output_aliases={0: 0} on pass 2 would drop the extra
    # HBM allocation when the caller donates x; left off since donation is
    # caller-dependent.

    return out.reshape(B, C, D, H, W)


def se_block_ref(x, w1, w2):
    """Pure-JAX reference matching the PyTorch forward."""
    y = jnp.mean(x, axis=(2, 3, 4))                  # (B, C)
    y = jnp.maximum(y @ w1.T, 0.0)                   # (B, C//r)
    y = jax.nn.sigmoid(y @ w2.T)                     # (B, C)
    return x * y[:, :, None, None, None]


if __name__ == "__main__":
    key = jax.random.PRNGKey(0)
    # (B, C, D, H, W, reduction, allow_fused, target_block_bytes)
    cases = [
        (2, 32, 4, 8, 8, 16, True,  None),        # fused path, S=256 aligned
        (2, 32, 3, 7, 7, 16, True,  None),        # fused path, ragged S=147
        (2, 32, 3, 7, 7, 16, False, 16 * 1024),   # two-pass, masked spatial tail
        (3, 32, 4, 8, 8, 16, False, 48 * 1024),   # two-pass, partial batch block
    ]
    for (B, C, D, H, W, reduction, allow_fused, tbb) in cases:
        Cr = C // reduction
        kx, k1, k2, key = jax.random.split(key, 4)
        x = jax.random.normal(kx, (B, C, D, H, W), dtype=jnp.float32)
        # deterministic PyTorch-Linear-style init (uniform in +-1/sqrt(fan_in))
        w1 = jax.random.uniform(k1, (Cr, C), jnp.float32,
                                minval=-1.0, maxval=1.0) / jnp.sqrt(C)
        w2 = jax.random.uniform(k2, (C, Cr), jnp.float32,
                                minval=-1.0, maxval=1.0) / jnp.sqrt(Cr)

        out = jax.block_until_ready(
            se_block(x, w1, w2, allow_fused=allow_fused, target_block_bytes=tbb))
        ref = jax.block_until_ready(se_block_ref(x, w1, w2))

        assert out.shape == x.shape
        assert jnp.allclose(out, ref, atol=1e-5, rtol=1e-5), \
            f"mismatch vs reference at shape {(B, C, D, H, W)}"
    print("KERNEL_OK")
</pallas_src>

<mosaic_0001>
module attributes {stable_mosaic.version = 11 : i64} {
  func.func @_fused_kernel(%arg0: i32, %arg1: memref<1x32x256xf32, #tpu.memory_space<vmem>>, %arg2: memref<2x32xf32, #tpu.memory_space<vmem>>, %arg3: memref<32x2xf32, #tpu.memory_space<vmem>>, %arg4: memref<1x32x256xf32, #tpu.memory_space<vmem>>, %arg5: memref<1x32x128xf32, #tpu.memory_space<vmem>>) attributes {dimension_semantics = [#tpu.dimension_semantics<parallel>], iteration_bounds = array<i64: 2>, scalar_prefetch = 0 : i64, scratch_operands = 1 : i64, tpu.core_type = #tpu.core_type<tc>, window_params = [{transform_indices = @transform_0, window_bounds = array<i64: 1, 32, 256>}, {pipeline_mode = #tpu.pipeline_mode<synchronous>, transform_indices = @transform_1, window_bounds = array<i64: 2, 32>}, {pipeline_mode = #tpu.pipeline_mode<synchronous>, transform_indices = @transform_2, window_bounds = array<i64: 32, 2>}, {transform_indices = @transform_3, window_bounds = array<i64: 1, 32, 256>}]} {
    %cst = arith.constant 0.000000e+00 : f32
    %0 = vector.broadcast %cst : f32 to vector<1x32x128xf32>
    %c0 = arith.constant 0 : index
    %c0_0 = arith.constant 0 : index
    %c0_1 = arith.constant 0 : index
    %1 = vector.load %arg5[%c0, %c0_0, %c0_1] : memref<1x32x128xf32, #tpu.memory_space<vmem>>, vector<1x32x128xf32>
    tpu.vector_store %arg5[%c0, %c0_0, %c0_1], %0 {strides = array<i32>} : memref<1x32x128xf32, #tpu.memory_space<vmem>>, vector<1x32x128xf32>,
    %c0_2 = arith.constant 0 : index
    %c0_3 = arith.constant 0 : index
    %c0_4 = arith.constant 0 : index
    %2 = vector.load %arg5[%c0_2, %c0_3, %c0_4] : memref<1x32x128xf32, #tpu.memory_space<vmem>>, vector<1x32x128xf32>
    %c0_i32 = arith.constant 0 : i32
    %c256_i32 = arith.constant 256 : i32
    %3 = arith.muli %c0_i32, %c256_i32 : i32
    %4 = tpu.assume_multiple %3, 256 : i32
    %c0_5 = arith.constant 0 : index
    %c0_6 = arith.constant 0 : index
    %5 = arith.index_cast %4 : i32 to index
    %6 = vector.load %arg1[%c0_5, %c0_6, %5] : memref<1x32x256xf32, #tpu.memory_space<vmem>>, vector<1x32x256xf32>
    %7 = vector.extract_strided_slice %6 {offsets = [0, 0, 0], sizes = [1, 32, 128], strides = [1, 1, 1]} : vector<1x32x256xf32> to vector<1x32x128xf32>
    %8 = arith.addf %2, %7 : vector<1x32x128xf32>
    %9 = vector.extract_strided_slice %6 {offsets = [0, 0, 128], sizes = [1, 32, 128], strides = [1, 1, 1]} : vector<1x32x256xf32> to vector<1x32x128xf32>
    %10 = arith.addf %8, %9 : vector<1x32x128xf32>
    %c1_i32 = arith.constant 1 : i32
    %c0_7 = arith.constant 0 : index
    %c0_8 = arith.constant 0 : index
    %c0_9 = arith.constant 0 : index
    %11 = vector.load %arg5[%c0_7, %c0_8, %c0_9] : memref<1x32x128xf32, #tpu.memory_space<vmem>>, vector<1x32x128xf32>
    tpu.vector_store %arg5[%c0_7, %c0_8, %c0_9], %10 {strides = array<i32>} : memref<1x32x128xf32, #tpu.memory_space<vmem>>, vector<1x32x128xf32>,
    %c0_10 = arith.constant 0 : index
    %c0_11 = arith.constant 0 : index
    %c0_12 = arith.constant 0 : index
    %12 = vector.load %arg5[%c0_10, %c0_11, %c0_12] : memref<1x32x128xf32, #tpu.memory_space<vmem>>, vector<1x32x128xf32>
    %cst_13 = arith.constant dense<0.000000e+00> : vector<1x32xf32>
    %13 = vector.multi_reduction <add>, %12, %cst_13 [2] : vector<1x32x128xf32> to vector<1x32xf32>
    %cst_14 = arith.constant 3.906250e-03 : f32
    %14 = vector.broadcast %cst_14 : f32 to vector<1x32xf32>
    %15 = arith.mulf %13, %14 : vector<1x32xf32>
    %c0_15 = arith.constant 0 : index
    %c0_16 = arith.constant 0 : index
    %16 = vector.load %arg2[%c0_15, %c0_16] : memref<2x32xf32, #tpu.memory_space<vmem>>, vector<2x32xf32>
    %c0_17 = arith.constant 0 : index
    %c0_18 = arith.constant 0 : index
    %17 = vector.load %arg3[%c0_17, %c0_18] : memref<32x2xf32, #tpu.memory_space<vmem>>, vector<32x2xf32>
    %cst_19 = arith.constant dense<0.000000e+00> : vector<1x2xf32>
    %18 = tpu.matmul %15, %16, %cst_19 {dimension_numbers = #tpu.dot_dimension_numbers<[1], [1], [0], [0], [0, 0, 1, 0], [], []>} : vector<1x32xf32>, vector<2x32xf32>, vector<1x2xf32> -> vector<1x2xf32>
    %cst_20 = arith.constant 0.000000e+00 : f32
    %19 = vector.broadcast %cst_20 : f32 to vector<1x2xf32>
    %20 = arith.maximumf %18, %19 : vector<1x2xf32>
    %cst_21 = arith.constant dense<0.000000e+00> : vector<1x32xf32>
    %21 = tpu.matmul %20, %17, %cst_21 {dimension_numbers = #tpu.dot_dimension_numbers<[1], [1], [0], [0], [0, 0, 1, 0], [], []>} : vector<1x2xf32>, vector<32x2xf32>, vector<1x32xf32> -> vector<1x32xf32>
    %22 = arith.negf %21 : vector<1x32xf32>
    %23 = math.exp %22 : vector<1x32xf32>
    %cst_22 = arith.constant 1.000000e+00 : f32
    %24 = vector.broadcast %cst_22 : f32 to vector<1x32xf32>
    %25 = arith.addf %24, %23 : vector<1x32xf32>
    %26 = arith.divf %24, %25 : vector<1x32xf32>
    %27 = vector.shape_cast %26 : vector<1x32xf32> to vector<1x32x1xf32>
    %28 = vector.shape_cast %27 : vector<1x32x1xf32> to vector<1x32x1xf32>
    %29 = vector.broadcast %28 : vector<1x32x1xf32> to vector<1x32x256xf32>
    %c0_i32_23 = arith.constant 0 : i32
    %c256_i32_24 = arith.constant 256 : i32
    %30 = arith.muli %c0_i32_23, %c256_i32_24 : i32
    %31 = tpu.assume_multiple %30, 256 : i32
    %c0_25 = arith.constant 0 : index
    %c0_26 = arith.constant 0 : index
    %32 = arith.index_cast %31 : i32 to index
    %33 = vector.load %arg1[%c0_25, %c0_26, %32] : memref<1x32x256xf32, #tpu.memory_space<vmem>>, vector<1x32x256xf32>
    %34 = arith.mulf %33, %29 : vector<1x32x256xf32>
    %c0_27 = arith.constant 0 : index
    %c0_28 = arith.constant 0 : index
    %35 = arith.index_cast %31 : i32 to index
    %36 = vector.load %arg4[%c0_27, %c0_28, %35] : memref<1x32x256xf32, #tpu.memory_space<vmem>>, vector<1x32x256xf32>
    tpu.vector_store %arg4[%c0_27, %c0_28, %35], %34 {strides = array<i32>} : memref<1x32x256xf32, #tpu.memory_space<vmem>>, vector<1x32x256xf32>,
    %c1_i32_29 = arith.constant 1 : i32
    return
  }
  func.func @transform_0(%arg0: i32) -> (i32, i32, i32) {
    %c0_i32 = arith.constant 0 : i32
    %c0_i32_0 = arith.constant 0 : i32
    %c0_i32_1 = arith.constant 0 : i32
    return %arg0, %c0_i32, %c0_i32_0 : i32, i32, i32
  }
  func.func @transform_1(%arg0: i32) -> (i32, i32) {
    %c0_i32 = arith.constant 0 : i32
    %c0_i32_0 = arith.constant 0 : i32
    %c0_i32_1 = arith.constant 0 : i32
    return %c0_i32, %c0_i32_0 : i32, i32
  }
  func.func @transform_2(%arg0: i32) -> (i32, i32) {
    %c0_i32 = arith.constant 0 : i32
    %c0_i32_0 = arith.constant 0 : i32
    %c0_i32_1 = arith.constant 0 : i32
    return %c0_i32, %c0_i32_0 : i32, i32
  }
  func.func @transform_3(%arg0: i32) -> (i32, i32, i32) {
    %c0_i32 = arith.constant 0 : i32
    %c0_i32_0 = arith.constant 0 : i32
    %c0_i32_1 = arith.constant 0 : i32
    return %arg0, %c0_i32, %c0_i32_0 : i32, i32, i32
  }
}

</mosaic_0001>

<bundles_post_ra>
// kernel: tpu_custom_call.1
= control target key start
LH: loop header
LB: loop body
LE: loop exit
PB: predicated region body
PF: predicated region fallthrough
CT: control target
= control target key end

     0   :  { %8 = vsyncpa [#allocation4], 0  ;;  %s1025_s0 = inlined_call_operand.hbm [shape: f32[2,32,256], index: 0, kind: input, shape index: {}]   ;;  %s1026_s1 = inlined_call_operand.vmem [shape: f32[2,32], index: 1, kind: input, shape index: {}]   ;;  %s1027_s2 = inlined_call_operand.vmem [shape: f32[32,2], index: 2, kind: input, shape index: {}]   ;;  %s1028_s3 = inlined_call_operand.hbm [shape: f32[2,32,256], index: 3, kind: output, shape index: {}]  }
   0x1   :  { %10 = vsyncpa [#allocation4 + $0x1], 0 }
   0x2   :  { %11 = vsyncpa [#allocation5], 0 }
   0x3   :  { %13 = vsyncpa [#allocation5 + $0x1], 0  ;;  %s807_s12 = smov 0   ;;  %s809_s13 = smov 0  }
   0x4   :  { %s811_s14 = smov 0   ;;  %s813_s15 = smov 0  }
   0x5 LB: > { %s828_s16 = sadd.s32 4294967295, %s776_s15   ;;  %s568_s17 = sadd.s32 4294967294, %s776_s15   ;;  %s776_s15 = sphi %s813_s15, %s1041_s15   ;;  %s772_s14 = sphi %s811_s14, %s1040_s14   ;;  %s768_s13 = sphi %s809_s13, %s1039_s13   ;;  %s764_s12 = sphi %s807_s12, %s1038_s12  }
   0x6   : > { %s832_s18 = sadd.s32 1, %s776_s15   ;;  %s26_s19 = sadd.s32 1, %s772_s14 }
   0x7   : > { %s23_s20 = ssub.s32 %s776_s15, %s832_s18  ;;  %p33_p0 = scmp.ne.s32.totalorder %s772_s14, %s768_s13 }
   0x8   : > { %p24_p1 = scmp.eq.s32.totalorder %s23_s20, 0  ;;  %p34_p2 = scmp.eq.s32.totalorder %s776_s15, 0 }
   0x9   : > { %p39_p3 = scmp.ne.s32.totalorder %s768_s13, %s764_s12  ;;  %p40_p4 = scmp.eq.s32.totalorder %s828_s16, 0 }
   0xa   : > { %s844_s21 = scalar_select %p24_p1, %s772_s14, %s26_s19  }
   0xb   : > { %p846_p5 = por %p34_p2, %p33_p0  ;;  %p850_p6 = por %p40_p4, %p39_p3 }
   0xc   : > { %p105_p7 = scmp.eq.s32.totalorder %s828_s16, 1  ;;  %p111_p8 = scmp.eq.s32.totalorder %s568_s17, 1 }
   0xd   : > { %p635_p10 = scmp.lt.s32.totalorder %s776_s15, 2  ;;  %s137_s26 = sand.u32 1, %s772_s14  }
   0xe   : > { %p857_p11 = por %p105_p7, %p33_p0  ;;  %p861_p12 = por %p111_p8, %p39_p3 }
   0xf   : > { %s590_s27 = sshll.u32 %s776_s15, 10  ;;  %s571_s28 = sshll.u32 %s137_s26, 6 }
  0x10   : > { %s1032_s24 = scalar_select %p857_p11, 1, 0 }
  0x11   : > { %s1033_s25 = scalar_select %p861_p12, 1, 0 }
  0x12   : > { %s870_s4 = scalar_lea.hbm %s1025_s0, %s590_s27  ;;  %s141_s5 = scalar_lea.vmem [#allocation3], %s571_s28 }
  0x13   : > { %s148_s6 = sshll.u32 %s141_s5, 4  ;;  %p874_p13 = pnand %p635_p10, %p846_p5  ;;  %s878_s6 = int_to_ptr.vmem [resolvable:$true] %s148_s6 }
  0x14   : > { %s880_s8 = scalar_lea.sflag [#allocation4], %s137_s26  ;;  %s680_s9 = scalar_lea.hbm %s870_s4, 1024 }
  0x15   : > { %p681_p0 = scmp.ne.s32.totalorder %s870_s4, %s680_s9  ;;  %p682_p1 = pneg %p874_p13 }
  0x16   : > { %s685_s17 = scalar_lea.hbm %s1025_s0, 2048  ;;  %p686_p4 = scmp.lt.u32.totalorder %s870_s4, %s1025_s0 }
  0x17   : > { %p683_p2 = pnand %p682_p1, %p681_p0  ;;  %p687_p5 = scmp.lt.u32.totalorder %s685_s17, %s680_s9 }
  0x18   : > { %p689_p8 = scmp.lt.u32.totalorder %s680_s9, %s870_s4 }
  0x19   : > { %p684_p3 = pneg %p683_p2  ;;  %p688_p7 = por %p687_p5, %p686_p4 }
  0x1b   : > { %p690_p10 = por %p689_p8, %p688_p7 }
  0x1d   : > { %p691_p9 = pnand %p690_p10, %p684_p3 }
  0x1f   : > { %694 = shalt.err (!%p691_p9)
}
  0x20   : > { %s695_s22 = scalar_lea.vmem %s878_s6, 1024  ;;  %s778_s26 = smov [#allocation3]  }
  0x21   : > { %p696_p0 = scmp.ne.s32.totalorder %s878_s6, %s695_s22  ;;  %s700_s27 = sshll.u32 %s778_s26, 4  ;;  %s701_s27 = int_to_ptr.vmem [resolvable:$false] %s700_s27 }
  0x22   : > { %s702_s28 = scalar_lea.vmem %s701_s27, 2048  ;;  %p703_p11 = scmp.lt.s32.totalorder %s878_s6, %s701_s27 }
  0x23   : > { %p698_p2 = pnand %p696_p0, %p682_p1  ;;  %p704_p4 = scmp.lt.s32.totalorder %s702_s28, %s695_s22 }
  0x25   : > { %p699_p12 = pneg %p698_p2  ;;  %p705_p5 = por %p704_p4, %p703_p11 }
  0x27   : > { %p706_p7 = pnand %p705_p5, %p699_p12 }
  0x29   : > { %709 = shalt.err (!%p706_p7)
}
  0x2a   : > { %s779_s29 = smov 256   ;;  %s780_s30 = smov 16  }
  0x2b   : > { %630 = dma.hbm_to_vmem [thread:$0]  (!%p874_p13), %s870_s4, 1024, %s878_s6, %s880_s8, %s779_s29, %s779_s29, %s780_s30  }
  0x2c   : > { %p574_p9 = scmp.ge.s32.totalorder %s776_s15, 1  ;;  %p156_p1 = scmp.lt.s32.totalorder %s776_s15, 3 }
  0x2e   : > { %p157_p3 = pnand %p574_p9, %p156_p1 }
  0x2f   : > { %s911_s5 = sand.u32 (!%p157_p3), 1, %s768_s13  }
  0x30   : > { %160 = sbr.rel (%p157_p3) target bundleno = 806 (0x326), region = 32  ;;  %s575_s9 = sshll.u32 (!%p157_p3), %s911_s5, 6 }
  0x31   : > { %s163_s10 = scalar_lea.sflag (!%p157_p3), [#allocation4], %s911_s5  ;;  %s166_s11 = scalar_lea.vmem (!%p157_p3), [#allocation3], %s575_s9 }
  0x37   : > { %755 = dma.done.wait (%p850_p6), %s163_s10, 1024  }
  0x38   : > { %757 = vsyncadd (%p850_p6), %s163_s10, 4294966272  ;;  %v921_v0 = vld [vmem:[%s166_s11] sm:$0xff]  ;;  %v923_v1 = vld [vmem:[%s166_s11 + $0x8] sm:$0xff]  ;;  %v781_v12 = vmov 0.0   ;;  %vm269_vm0 = vcmask 261120   ;;  %vm782_vm1 = vmmov 0   ;;  %v242_v21 = vlaneseq }
  0x39   : > { %v925_v2 = vld [vmem:[%s166_s11 + $0x20] sm:$0xff]  ;;  %v209_v3 = vadd.f32 %v923_v1, %v921_v0  ;;  %v929_v4 = vld [vmem:[%s166_s11 + $0x28] sm:$0xff]  ;;  %v931_v5 = vld [vmem:[%s166_s11 + $0x10] sm:$0xff]  ;;  %599 = vmatprep.subr.mxu0 %v781_v12  ;;  %601 = vmatprep.mubr.msk.f32.mxu0 %vm782_vm1, %v781_v12  ;;  %vm346_vm2 = vcmask 15360   ;;  %v783_v16 = vmov 0.0|0.0   ;;  %vm253_vm4 = vcmask 130112  }
  0x3a   : > { %v933_v6 = vld [vmem:[%s166_s11 + $0x18] sm:$0xff]  ;;  %v211_v7 = vadd.f32 %v929_v4, %v925_v2  ;;  %v937_v8 = vld [vmem:[%s166_s11 + $0x30] sm:$0xff]  ;;  %v233_v13 = vld [vmem:[%s1026_s1] sm:$0x3]  ;;  %612 = vmatprep.mubr.msk.f32.mxu1 %vm782_vm1, %v781_v12  ;;  %615 = vmatprep.subr.bf16.mxu1 %v783_v16  ;;  %v243_v22 = vand.u32 127, %v242_v21  ;;  %v245_v23 = vshrl.u32 %v242_v21, 7 }
  0x3b   : > { %v939_v9 = vld [vmem:[%s166_s11 + $0x38] sm:$0xff]  ;;  %221 = vadd.xlane.f32.xlu0 %v209_v3  ;;  %v210_v10 = vadd.f32 %v933_v6, %v931_v5  ;;  %600 = vmatpush3.xpose.msk.msra.mxu0 %vm269_vm0, %v233_v13  ;;  %v234_v14 = vld [vmem:[%s1027_s2] sm:$0xff]  ;;  %v235_v15 = vld [vmem:[%s1027_s2 + $0x8] sm:$0xff]  ;;  %vm260_vm5 = vcmask 195712   ;;  %vm267_vm6 = vcmask 261312   ;;  %s188_s27 = scalar_lea.vmem [#allocation6], %s575_s9 }
  0x3c   : > { %225 = vadd.xlane.f32.xlu1 %v211_v7  ;;  %v212_v11 = vadd.f32 %v939_v9, %v937_v8  ;;  %v616_v17 = vpack.c.bf16 %v235_v15, %v234_v14  ;;  %vm617_vm3 = vmpackc.low %vm346_vm2, %vm346_vm2  ;;  %v236_v18 = vld [vmem:[%s1027_s2 + $0x10] sm:$0xff]  ;;  %v237_v19 = vld [vmem:[%s1027_s2 + $0x18] sm:$0xff]  ;;  %v248_v24 = vadd.s32 4294967288, %v243_v22  ;;  %v255_v26 = vadd.s32 4294967280, %v243_v22  ;;  %s495_s28 = sshll.u32 %s188_s27, 4  ;;  %s591_s29 = sshll.u32 %s828_s16, 10  ;;  %s974_s28 = int_to_ptr.vmem [resolvable:$true] %s495_s28 }
  0x3d   : > { %v620_v20 = vpack.c.bf16 %v237_v19, %v236_v18  ;;  %v262_v27 = vadd.s32 4294967272, %v243_v22  ;;  %v246_v29 = vsub.s32 %v243_v22, %v245_v23  ;;  %v440_v54 = vsub.s32 0, %v245_v23  ;;  %s979_s10 = scalar_lea.hbm %s1028_s3, %s591_s29  ;;  %s482_s16 = scalar_lea.sflag [#allocation5], %s911_s5 }
  0x3e   : > { %618 = vmatpush3.bf16.xpose.msk.msra.mxu1 %vm617_vm3, %v616_v17  ;;  %v251_v31 = vsub.s32 %v248_v24, %v245_v23  ;;  %v258_v32 = vsub.s32 %v255_v26, %v245_v23  ;;  %s710_s11 = scalar_lea.vmem %s974_s28, 1024  ;;  %p1035_p11 = scmp.ne.s32.totalorder %s1032_s24, 0 }
  0x3f   : > { %223 = vadd.xlane.f32.xlu0 %v210_v10  ;;  %619 = vmatprep.subr.bf16.mxu1 %v783_v16  ;;  %v265_v35 = vsub.s32 %v262_v27, %v245_v23  ;;  %p711_p6 = scmp.ne.s32.totalorder %s974_s28, %s710_s11  ;;  %s784_s23 = smov [#allocation6]  }
  0x40   : > { %227 = vadd.xlane.f32.xlu1 %v212_v11  ;;  %s714_s4 = sshll.u32 %s784_s23, 4  ;;  %s715_s4 = int_to_ptr.vmem [resolvable:$false] %s714_s4 }
  0x41   : > { %p712_p12 = pnand %p711_p6, %p1035_p11  ;;  %s716_s6 = scalar_lea.vmem %s715_s4, 2048 }
  0x42   : > { %p717_p8 = scmp.lt.s32.totalorder %s974_s28, %s715_s4  ;;  %p718_p10 = scmp.lt.s32.totalorder %s716_s6, %s710_s11 }
  0x43   : > { %p713_p13 = pneg %p712_p12 }
  0x44   : > { %p719_p0 = por %p718_p10, %p717_p8 }
  0x46   : > { %622 = vmatpush3.bf16.xpose.msk.msra.mxu1 %vm617_vm3, %v620_v20  ;;  %p720_p2 = pnand %p719_p0, %p713_p13 }
  0xc8   : > { %v222_v25 = vpop.xlane.xlu0 %221 }
  0xc9   : > { %v226_v28 = vpop.xlane.xlu1 %225  ;;  %v229_v30 = vmul.f32 0.00390625, %v222_v25 }
  0xca   : > { %v231_v33 = vmul.f32 0.00390625, %v226_v28 }
  0xcb   : > { %v247_v39 = vrot.slane %v229_v30, %v246_v29 }
  0xcc   : > { %v224_v34 = vpop.xlane.xlu0 %223  ;;  %v259_v41 = vrot.slane %v231_v33, %v258_v32 }
  0xcd   : > { %v230_v36 = vmul.f32 0.00390625, %v224_v34  ;;  %v228_v37 = vpop.xlane.xlu1 %227 }
  0xce   : > { %v232_v38 = vmul.f32 0.00390625, %v228_v37 }
  0xcf   : > { %v252_v40 = vrot.slane %v230_v36, %v251_v31 }
  0xd0   : > { %v266_v42 = vrot.slane %v232_v38, %v265_v35 }
  0xd1   : > { %v254_v43 = vsel %vm253_vm4, %v252_v40, %v247_v39 }
  0xd2   : > { %v261_v44 = vsel %vm260_vm5, %v259_v41, %v254_v43 }
  0xd3   : > { %v268_v45 = vsel %vm267_vm6, %v266_v42, %v261_v44 }
  0xd4   : > { %602 = vmatmul.mubr.msk.f32.vlgmr.msra.gmra.mrb[0].mxu0 %vm269_vm0, %v268_v45 }
 0x1a7   : > { %v341_v46 = vpop.f32.mrb[0].mxu0 }
 0x1a8   : > { %v345_v47 = vmax.f32 %v341_v46, 0.0  ;;  %v603_v48 = vpop.f32.mrb[1].mxu0 }
 0x1aa   : > { %613 = vmatmul.mubr.msk.f32.vlgmr.msra.gmra.mrb[0].mxu1 %vm346_vm2, %v345_v47 }
 0x27d   : > { %v428_v49 = vpop.f32.mrb[0].mxu1 }
 0x27e   : > { %v584_v50 = vmul.f32 -1.442695, %v428_v49  ;;  %v614_v51 = vpop.f32.mrb[1].mxu1 }
 0x280   : > { %676 = vpow2.f32 %v584_v50 }
 0x28a   : > { %v677_v52 = vpop.eup %676 }
 0x28b   : > { %v435_v53 = vadd.f32 1.0, %v677_v52 }
 0x28d   : > { %678 = vrcp.f32 %v435_v53 }
 0x297   : > { %v679_v55 = vpop.eup %678 }
 0x298   : > { %v441_v56 = vrot.slane %v679_v55, %v440_v54 }
 0x29a   : > { %447 = vbcast.lane.b32.xlu1 %v441_v56, 264  ;;  %443 = vbcast.lane.b32.xlu0 %v441_v56, 256 }
 0x29e   : > { %451 = vbcast.lane.b32.xlu1 %v441_v56, 272 }
 0x2a2   : > { %455 = vbcast.lane.b32.xlu1 %v441_v56, 280 }
 0x30c   : > { %v448_v57 = vpop.permute.xlu1 %447  ;;  %v444_v58 = vpop.permute.xlu0 %443 }
 0x30d   : > { %v467_v59 = vmul.f32 %v448_v57, %v931_v5  ;;  %v468_v60 = vmul.f32 %v448_v57, %v933_v6  ;;  %v465_v61 = vmul.f32 %v444_v58, %v921_v0  ;;  %v466_v62 = vmul.f32 %v444_v58, %v923_v1 }
 0x30f   : > { %475 = vst [vmem:[%s188_s27 + $0x10] sm:$0xff] %v467_v59  ;;  %476 = vst [vmem:[%s188_s27 + $0x18] sm:$0xff] %v468_v60 }
 0x310   : > { %473 = vst [vmem:[%s188_s27] sm:$0xff] %v465_v61  ;;  %474 = vst [vmem:[%s188_s27 + $0x8] sm:$0xff] %v466_v62  ;;  %v452_v63 = vpop.permute.xlu1 %451 }
 0x311   : > { %v469_v3 = vmul.f32 %v452_v63, %v925_v2  ;;  %v470_v5 = vmul.f32 %v452_v63, %v929_v4 }
 0x313   : > { %477 = vst [vmem:[%s188_s27 + $0x20] sm:$0xff] %v469_v3  ;;  %478 = vst [vmem:[%s188_s27 + $0x28] sm:$0xff] %v470_v5 }
 0x314   : > { %v456_v0 = vpop.permute.xlu1 %455 }
 0x315   : > { %v471_v1 = vmul.f32 %v456_v0, %v937_v8  ;;  %v472_v2 = vmul.f32 %v456_v0, %v939_v9 }
 0x317   : > { %479 = vst [vmem:[%s188_s27 + $0x30] sm:$0xff] %v471_v1  ;;  %480 = vst [vmem:[%s188_s27 + $0x38] sm:$0xff] %v472_v2 }
 0x318   : > { %723 = shalt.err (!%p720_p2)
}
 0x319   : > { %s724_s7 = scalar_lea.hbm %s979_s10, 1024  ;;  %s728_s19 = scalar_lea.hbm %s1028_s3, 2048 }
 0x31a   : > { %p725_p4 = scmp.ne.s32.totalorder %s979_s10, %s724_s7  ;;  %p729_p9 = scmp.lt.u32.totalorder %s979_s10, %s1028_s3 }
 0x31b   : > { %p730_p1 = scmp.lt.u32.totalorder %s728_s19, %s724_s7  ;;  %p732_p6 = scmp.lt.u32.totalorder %s724_s7, %s979_s10 }
 0x31c   : > { %p726_p5 = pnand %p725_p4, %p1035_p11 }
 0x31d   : > { %p731_p3 = por %p730_p1, %p729_p9 }
 0x31e   : > { %p727_p7 = pneg %p726_p5 }
 0x31f   : > { %p733_p12 = por %p732_p6, %p731_p3 }
 0x321   : > { %p734_p13 = pnand %p733_p12, %p727_p7 }
 0x323   : > { %737 = shalt.err (!%p734_p13)
}
 0x324   : > { %s785_s26 = smov 256   ;;  %s786_s27 = smov 16  }
 0x325   : > { %625 = dma.vmem_to_hbm [thread:$0]  (%p1035_p11), %s974_s28, 1024, %s979_s10, %s482_s16, %s785_s26, %s785_s26, %s786_s27  }
 0x326 PF: > { %s510_s29 = sand.u32 1, %s764_s12   ;;  %p1036_p8 = scmp.ne.s32.totalorder %s1033_s25, 0 }
 0x327   : > { %p1037_p10 = scmp.ge.s32.totalorder %s776_s15, 2  ;;  %s511_s30 = scalar_lea.sflag [#allocation5], %s510_s29 }
 0x329   : > { %p632_p0 = pnand %p1037_p10, %p1036_p8 }
 0x32b   : > { %759 = dma.done.wait (!%p632_p0), %s511_s30, 1024  }
 0x32c   : > { %761 = vsyncadd (!%p632_p0), %s511_s30, 4294966272  ;;  %p16_p2 = scmp.ge.s32.totalorder %s832_s18, 4   ;;  %s1038_s12 = smov %s768_s13 }
 0x32d   : > { %s1039_s13 = smov %s772_s14  ;;  %s1040_s14 = smov %s844_s21 }
 0x32e   : > { %s1041_s15 = smov %s832_s18  ;;  %18 = sbr.rel (!%p16_p2) target bundleno = 5 (0x5), region = 77 }
 0x335   :  { %516 = vsyncpa [#allocation4], 1 }
 0x336   :  { %518 = vsyncpa [#allocation4 + $0x1], 1 }
 0x337   :  { %519 = vsyncpa [#allocation5], 1 }
 0x338   :  { %521 = vsyncpa [#allocation5 + $0x1], 1 }

</bundles_post_ra>
